<compile_context>
chip_gen: v6e
topology: v6e:2x2x1
jax: 0.10.0
libtpu: 0.0.40
codegen_flags: <defaults>
</compile_context>

<pallas_src>
import functools

import jax
import jax.numpy as jnp
from jax.experimental import pallas as pl
from jax.experimental.pallas import tpu as pltpu


def _round_up(x, m):
    return (x + m - 1) // m * m


def _angle_loss_kernel(tgt_ref, cos_ref, psi_ref, out_ref, acc_ref, *,
                       lamb, gamma, true_b, tile_rows):
    """Per-batch-tile kernel: margin blend + log_softmax + gather + focal loss.

    Accumulates the (masked) per-tile loss sum into acc_ref; the last grid step
    writes sum / true_b to the (1, 1) output.
    """
    i = pl.program_id(0)
    n = pl.num_programs(0)

    @pl.when(i == 0)
    def _init():
        acc_ref[...] = jnp.zeros_like(acc_ref)

    cos_t = cos_ref[...].astype(jnp.float32)           # (TB, C) — cast in-kernel
    psi_t = psi_ref[...].astype(jnp.float32)           # (TB, C)
    tgt = tgt_ref[...]                                  # (TB, 1) int32

    TB, C = cos_t.shape

    # scatter_(1, target, 1) -> one-hot mask via iota/compare.
    # (Out-of-range targets give an all-false row, matching "silently ignore".)
    col = jax.lax.broadcasted_iota(jnp.int32, (TB, C), 1)
    mask = col == tgt                                    # (TB, C) bool

    # output = cos_theta; output[mask] += (psi - cos) / (1 + lamb)
    coeff = 1.0 / (1.0 + lamb)
    out = cos_t + jnp.where(mask, (psi_t - cos_t) * coeff, 0.0)

    # F.log_softmax over dim=1, then gather the target column via the one-hot mask.
    m = jnp.max(out, axis=1, keepdims=True)
    lse = jnp.log(jnp.sum(jnp.exp(out - m), axis=1, keepdims=True)) + m
    logpt = jnp.sum(jnp.where(mask, out, 0.0), axis=1, keepdims=True) - lse  # (TB, 1)

    if gamma == 0:
        loss = -logpt                                    # (1 - pt)**0 == 1
    else:
        pt = jnp.exp(logpt)
        base = 1.0 - pt
        g_int = int(gamma) if float(gamma).is_integer() else None
        if g_int is not None and 0 < g_int <= 8:
            w = base                                     # repeated multiplies: VALU,
            for _ in range(g_int - 1):                   # not EUP log+exp
                w = w * base
        else:
            w = base ** gamma
        loss = -w * logpt

    # Mask out padded tail rows (global row index >= true batch size).
    row = jax.lax.broadcasted_iota(jnp.int32, (TB, 1), 0) + i * tile_rows
    loss = jnp.where(row < true_b, loss, 0.0)

    acc_ref[...] += jnp.sum(loss, axis=(0, 1), keepdims=True)

    @pl.when(i == n - 1)
    def _finalize():
        out_ref[...] = acc_ref[...] * (1.0 / float(true_b))


def angle_loss(cos_theta, psi_theta, target, *, it=1, gamma=0,
               lambda_min=5.0, lambda_max=1500.0, tile_rows=None,
               max_tile_bytes=4 * 1024 * 1024):
    """JAX wrapper reproducing AngleLoss.forward((cos_theta, psi_theta), target).

    `it` is the post-increment iteration counter (first call => it=1) and must be
    a static Python number (the lambda schedule is computed host-side).
    Inputs may be f32 or bf16; compute is f32 inside the kernel.
    """
    B, C = cos_theta.shape
    assert psi_theta.shape == (B, C)
    lamb = max(lambda_min, lambda_max / (1.0 + 0.1 * it))

    itemsize = jnp.dtype(cos_theta.dtype).itemsize

    # Batch tile: multiple of 8 sublanes; one (TB, C) input block capped at
    # max_tile_bytes so 2 inputs x 2 pipeline buffers fit every generation's VMEM.
    cap = max(8, (max_tile_bytes // max(1, C * itemsize)) // 8 * 8)
    tb = _round_up(B, 8) if tile_rows is None else _round_up(int(tile_rows), 8)
    tb = max(8, min(tb, cap, _round_up(B, 8)))

    b_padded = _round_up(B, tb)
    num_tiles = b_padded // tb

    tgt = target.reshape(-1, 1).astype(jnp.int32)        # (B, 1)
    if b_padded != B:
        pad = b_padded - B
        cos_theta = jnp.pad(cos_theta, ((0, pad), (0, 0)))
        psi_theta = jnp.pad(psi_theta, ((0, pad), (0, 0)))
        tgt = jnp.pad(tgt, ((0, pad), (0, 0)))

    kernel = functools.partial(_angle_loss_kernel, lamb=float(lamb), gamma=gamma,
                               true_b=int(B), tile_rows=int(tb))

    # NOTE: for very large class counts (10k+ identities) a class-axis grid with an
    # online log-sum-exp would bound the per-tile working set; unnecessary here.
    out = pl.pallas_call(
        kernel,
        out_shape=jax.ShapeDtypeStruct((1, 1), jnp.float32),
        grid=(num_tiles,),
        in_specs=[
            pl.BlockSpec((tb, 1), lambda i: (i, 0)),     # target
            pl.BlockSpec((tb, C), lambda i: (i, 0)),     # cos_theta (native dtype)
            pl.BlockSpec((tb, C), lambda i: (i, 0)),     # psi_theta (native dtype)
        ],
        out_specs=pl.BlockSpec((1, 1), lambda i: (0, 0)),
        scratch_shapes=[pltpu.VMEM((1, 1), jnp.float32)],
        compiler_params=pltpu.CompilerParams(
            dimension_semantics=("arbitrary",),          # sequential accumulator
            vmem_limit_bytes=32 * 1024 * 1024,           # safe on v5e/v6e/v7x
        ),
    )(tgt, cos_theta, psi_theta)

    return out[0, 0]


def angle_loss_ref(cos_theta, psi_theta, target, *, it=1, gamma=0):
    """Pure-JAX reference mirroring the PyTorch semantics (for validation)."""
    lamb = max(5.0, 1500.0 / (1.0 + 0.1 * it))
    B, C = cos_theta.shape
    cos_theta = cos_theta.astype(jnp.float32)
    psi_theta = psi_theta.astype(jnp.float32)
    onehot = jax.nn.one_hot(target, C, dtype=jnp.float32)
    out = cos_theta + onehot * ((psi_theta - cos_theta) / (1.0 + lamb))
    logp = jax.nn.log_softmax(out, axis=1)
    logpt = jnp.take_along_axis(logp, target.reshape(-1, 1), axis=1).reshape(-1)
    pt = jnp.exp(logpt)
    loss = -1.0 * (1.0 - pt) ** gamma * logpt
    return loss.mean()


if __name__ == "__main__":
    key = jax.random.PRNGKey(0)
    k1, k2, k3 = jax.random.split(key, 3)

    B, C = 20, 128  # batch (deliberately not a multiple of the tile), num classes
    cos_theta = jax.random.uniform(k1, (B, C), jnp.float32, minval=-1.0, maxval=1.0)
    psi_theta = jax.random.uniform(k2, (B, C), jnp.float32, minval=-3.0, maxval=1.0)
    target = jax.random.randint(k3, (B,), 0, C, dtype=jnp.int32)

    # 1) gamma=0, forced small tile (8 rows) -> 3-tile grid with a masked padded tail.
    loss0 = jax.block_until_ready(
        angle_loss(cos_theta, psi_theta, target, it=1, gamma=0, tile_rows=8))
    ref0 = angle_loss_ref(cos_theta, psi_theta, target, it=1, gamma=0)
    assert jnp.allclose(loss0, ref0, atol=1e-5, rtol=1e-5), (loss0, ref0)

    # 2) gamma=2 focal path with native bf16 inputs (cast to f32 inside the kernel).
    cos_bf = cos_theta.astype(jnp.bfloat16)
    psi_bf = psi_theta.astype(jnp.bfloat16)
    loss2 = jax.block_until_ready(angle_loss(cos_bf, psi_bf, target, it=3, gamma=2))
    ref2 = angle_loss_ref(cos_bf, psi_bf, target, it=3, gamma=2)
    assert jnp.allclose(loss2, ref2, atol=1e-4, rtol=1e-4), (loss2, ref2)

    print("KERNEL_OK")
</pallas_src>

<mosaic_0001>
module attributes {stable_mosaic.version = 11 : i64} {
  func.func @_angle_loss_kernel(%arg0: i32, %arg1: memref<8x1xi32, #tpu.memory_space<vmem>>, %arg2: memref<8x128xf32, #tpu.memory_space<vmem>>, %arg3: memref<8x128xf32, #tpu.memory_space<vmem>>, %arg4: memref<1x1xf32, #tpu.memory_space<vmem>>, %arg5: memref<1x1xf32, #tpu.memory_space<vmem>>) attributes {dimension_semantics = [#tpu.dimension_semantics<arbitrary>], iteration_bounds = array<i64: 3>, scalar_prefetch = 0 : i64, scratch_operands = 1 : i64, tpu.core_type = #tpu.core_type<tc>, window_params = [{transform_indices = @transform_0, window_bounds = array<i64: 8, 1>}, {transform_indices = @transform_1, window_bounds = array<i64: 8, 128>}, {transform_indices = @transform_2, window_bounds = array<i64: 8, 128>}, {pipeline_mode = #tpu.pipeline_mode<synchronous>, transform_indices = @transform_3, window_bounds = array<i64: 1, 1>}]} {
    %c0_i32 = arith.constant 0 : i32
    %0 = arith.cmpi eq, %arg0, %c0_i32 : i32
    %1 = arith.extui %0 : i1 to i32
    %c0_i32_0 = arith.constant 0 : i32
    %2 = arith.cmpi ne, %1, %c0_i32_0 : i32
    scf.if %2 {
      %cst_19 = arith.constant 0.000000e+00 : f32
      %50 = vector.broadcast %cst_19 : f32 to vector<1x1xf32>
      %c0_20 = arith.constant 0 : index
      %c0_21 = arith.constant 0 : index
      %51 = vector.load %arg5[%c0_20, %c0_21] : memref<1x1xf32, #tpu.memory_space<vmem>>, vector<1x1xf32>
      tpu.vector_store %arg5[%c0_20, %c0_21], %50 {strides = array<i32>} : memref<1x1xf32, #tpu.memory_space<vmem>>, vector<1x1xf32>,
    } else {
    }
    %c0 = arith.constant 0 : index
    %c0_1 = arith.constant 0 : index
    %3 = vector.load %arg2[%c0, %c0_1] : memref<8x128xf32, #tpu.memory_space<vmem>>, vector<8x128xf32>
    %c0_2 = arith.constant 0 : index
    %c0_3 = arith.constant 0 : index
    %4 = vector.load %arg3[%c0_2, %c0_3] : memref<8x128xf32, #tpu.memory_space<vmem>>, vector<8x128xf32>
    %c0_4 = arith.constant 0 : index
    %c0_5 = arith.constant 0 : index
    %5 = vector.load %arg1[%c0_4, %c0_5] : memref<8x1xi32, #tpu.memory_space<vmem>>, vector<8x1xi32>
    %6 = tpu.iota {dimensions = array<i32: 1>} : vector<8x128xi32>
    %7 = vector.broadcast %5 : vector<8x1xi32> to vector<8x128xi32>
    %8 = arith.cmpi eq, %6, %7 : vector<8x128xi32>
    %9 = arith.subf %4, %3 : vector<8x128xf32>
    %cst = arith.constant 7.327960e-04 : f32
    %10 = vector.broadcast %cst : f32 to vector<8x128xf32>
    %11 = arith.mulf %9, %10 : vector<8x128xf32>
    %cst_6 = arith.constant 0.000000e+00 : f32
    %12 = vector.broadcast %cst_6 : f32 to vector<8x128xf32>
    %13 = arith.select %8, %11, %12 : vector<8x128xi1>, vector<8x128xf32>
    %14 = arith.addf %3, %13 : vector<8x128xf32>
    %cst_7 = arith.constant dense<0xFF800000> : vector<8xf32>
    %15 = vector.multi_reduction <maximumf>, %14, %cst_7 [1] : vector<8x128xf32> to vector<8xf32>
    %16 = vector.shape_cast %15 : vector<8xf32> to vector<8x1xf32>
    %17 = vector.broadcast %16 : vector<8x1xf32> to vector<8x128xf32>
    %18 = arith.subf %14, %17 : vector<8x128xf32>
    %19 = math.exp %18 : vector<8x128xf32>
    %cst_8 = arith.constant dense<0.000000e+00> : vector<8xf32>
    %20 = vector.multi_reduction <add>, %19, %cst_8 [1] : vector<8x128xf32> to vector<8xf32>
    %21 = vector.shape_cast %20 : vector<8xf32> to vector<8x1xf32>
    %22 = math.log %21 : vector<8x1xf32>
    %23 = arith.addf %22, %16 : vector<8x1xf32>
    %cst_9 = arith.constant 0.000000e+00 : f32
    %24 = vector.broadcast %cst_9 : f32 to vector<8x128xf32>
    %25 = arith.select %8, %14, %24 : vector<8x128xi1>, vector<8x128xf32>
    %cst_10 = arith.constant dense<0.000000e+00> : vector<8xf32>
    %26 = vector.multi_reduction <add>, %25, %cst_10 [1] : vector<8x128xf32> to vector<8xf32>
    %27 = vector.shape_cast %26 : vector<8xf32> to vector<8x1xf32>
    %28 = arith.subf %27, %23 : vector<8x1xf32>
    %cst_11 = arith.constant 0.000000e+00 : f32
    %29 = vector.broadcast %cst_11 : f32 to vector<8x1xf32>
    %30 = arith.subf %29, %28 : vector<8x1xf32>
    %31 = tpu.iota {dimensions = array<i32: 0>} : vector<8x1xi32>
    %c8_i32 = arith.constant 8 : i32
    %32 = arith.muli %arg0, %c8_i32 : i32
    %33 = vector.broadcast %32 : i32 to vector<8x1xi32>
    %34 = arith.addi %31, %33 : vector<8x1xi32>
    %c20_i32 = arith.constant 20 : i32
    %35 = vector.broadcast %c20_i32 : i32 to vector<8x1xi32>
    %36 = arith.cmpi slt, %34, %35 : vector<8x1xi32>
    %cst_12 = arith.constant 0.000000e+00 : f32
    %37 = vector.broadcast %cst_12 : f32 to vector<8x1xf32>
    %38 = arith.select %36, %30, %37 : vector<8x1xi1>, vector<8x1xf32>
    %c0_13 = arith.constant 0 : index
    %c0_14 = arith.constant 0 : index
    %39 = vector.load %arg5[%c0_13, %c0_14] : memref<1x1xf32, #tpu.memory_space<vmem>>, vector<1x1xf32>
    %40 = vector.shape_cast %38 : vector<8x1xf32> to vector<1x8x1xf32>
    %cst_15 = arith.constant dense<0.000000e+00> : vector<1xf32>
    %41 = vector.multi_reduction <add>, %40, %cst_15 [1, 2] : vector<1x8x1xf32> to vector<1xf32>
    %42 = vector.shape_cast %41 : vector<1xf32> to vector<1x1x1xf32>
    %43 = vector.extract %42[0, 0, 0] : f32 from vector<1x1x1xf32>
    %44 = vector.broadcast %43 : f32 to vector<1x1xf32>
    %45 = arith.addf %39, %44 : vector<1x1xf32>
    %c0_16 = arith.constant 0 : index
    %c0_17 = arith.constant 0 : index
    %46 = vector.load %arg5[%c0_16, %c0_17] : memref<1x1xf32, #tpu.memory_space<vmem>>, vector<1x1xf32>
    tpu.vector_store %arg5[%c0_16, %c0_17], %45 {strides = array<i32>} : memref<1x1xf32, #tpu.memory_space<vmem>>, vector<1x1xf32>,
    %c2_i32 = arith.constant 2 : i32
    %47 = arith.cmpi eq, %arg0, %c2_i32 : i32
    %48 = arith.extui %47 : i1 to i32
    %c0_i32_18 = arith.constant 0 : i32
    %49 = arith.cmpi ne, %48, %c0_i32_18 : i32
    scf.if %49 {
      %c0_19 = arith.constant 0 : index
      %c0_20 = arith.constant 0 : index
      %50 = vector.load %arg5[%c0_19, %c0_20] : memref<1x1xf32, #tpu.memory_space<vmem>>, vector<1x1xf32>
      %cst_21 = arith.constant 5.000000e-02 : f32
      %51 = vector.broadcast %cst_21 : f32 to vector<1x1xf32>
      %52 = arith.mulf %50, %51 : vector<1x1xf32>
      %c0_22 = arith.constant 0 : index
      %c0_23 = arith.constant 0 : index
      %53 = vector.load %arg4[%c0_22, %c0_23] : memref<1x1xf32, #tpu.memory_space<vmem>>, vector<1x1xf32>
      tpu.vector_store %arg4[%c0_22, %c0_23], %52 {strides = array<i32>} : memref<1x1xf32, #tpu.memory_space<vmem>>, vector<1x1xf32>,
    } else {
    }
    return
  }
  func.func @transform_0(%arg0: i32) -> (i32, i32) {
    %c0_i32 = arith.constant 0 : i32
    %c0_i32_0 = arith.constant 0 : i32
    return %arg0, %c0_i32 : i32, i32
  }
  func.func @transform_1(%arg0: i32) -> (i32, i32) {
    %c0_i32 = arith.constant 0 : i32
    %c0_i32_0 = arith.constant 0 : i32
    return %arg0, %c0_i32 : i32, i32
  }
  func.func @transform_2(%arg0: i32) -> (i32, i32) {
    %c0_i32 = arith.constant 0 : i32
    %c0_i32_0 = arith.constant 0 : i32
    return %arg0, %c0_i32 : i32, i32
  }
  func.func @transform_3(%arg0: i32) -> (i32, i32) {
    %c0_i32 = arith.constant 0 : i32
    %c0_i32_0 = arith.constant 0 : i32
    %c0_i32_1 = arith.constant 0 : i32
    return %c0_i32, %c0_i32_0 : i32, i32
  }
}

</mosaic_0001>

<bundles_post_ra>
// kernel: tpu_custom_call.1
= control target key start
LH: loop header
LB: loop body
LE: loop exit
PB: predicated region body
PF: predicated region fallthrough
CT: control target
= control target key end

     0   :  { %8 = vsyncpa [#allocation4], 0  ;;  %s658_s0 = inlined_call_operand.vmem [shape: s32[24,1], index: 0, kind: input, shape index: {}]   ;;  %s659_s1 = inlined_call_operand.vmem [shape: f32[24,128], index: 1, kind: input, shape index: {}]   ;;  %s660_s2 = inlined_call_operand.hbm [shape: f32[24,128], index: 2, kind: input, shape index: {}]   ;;  %s661_s3 = inlined_call_operand.hbm [shape: f32[1,1], index: 3, kind: output, shape index: {}]  }
   0x1   :  { %10 = vsyncpa [#allocation4 + $0x1], 0 }
   0x2   :  { %11 = vsyncpa [#allocation5], 0  ;;  %s540_s12 = smov 0   ;;  %s542_s13 = smov 0  }
   0x3   :  { %s544_s14 = smov 0   ;;  %s546_s15 = smov 0  }
   0x4 LB: > { %s559_s16 = sadd.s32 4294967295, %s514_s15   ;;  %s562_s17 = sadd.s32 1, %s514_s15   ;;  %s514_s15 = sphi %s546_s15, %s671_s15   ;;  %s510_s14 = sphi %s544_s14, %s670_s14   ;;  %s506_s13 = sphi %s542_s13, %s669_s13   ;;  %s502_s12 = sphi %s540_s12, %s668_s12  }
   0x5   : > { %s73_s18 = ssub.s32 %s514_s15, %s562_s17  ;;  %s76_s19 = sadd.s32 1, %s510_s14 }
   0x6   : > { %p74_p0 = scmp.eq.s32.totalorder %s73_s18, 0  ;;  %p83_p1 = scmp.ne.s32.totalorder %s510_s14, %s506_s13 }
   0x7   : > { %p84_p2 = scmp.eq.s32.totalorder %s514_s15, 0  ;;  %p89_p3 = scmp.ne.s32.totalorder %s506_s13, %s502_s12 }
   0x8   : > { %s572_s20 = scalar_select %p74_p0, %s510_s14, %s76_s19  }
   0x9   : > { %p85_p4 = por %p84_p2, %p83_p1  ;;  %p90_p5 = scmp.eq.s32.totalorder %s559_s16, 0 }
   0xa   : > { %p381_p6 = scmp.lt.s32.totalorder %s514_s15, 3  ;;  %s148_s22 = sand.u32 1, %s510_s14  }
   0xb   : > { %p576_p7 = por %p90_p5, %p89_p3  ;;  %s356_s23 = sshll.u32 %s148_s22, 3 }
   0xc   : > { %s357_s24 = sshll.u32 %s514_s15, 7  ;;  %s152_s28 = scalar_lea.vmem [#allocation3], %s356_s23 }
   0xd   : > { %s663_s21 = scalar_select %p576_p7, 1, 0 }
   0xe   : > { %s585_s27 = scalar_lea.hbm %s660_s2, %s357_s24  ;;  %s159_s29 = sshll.u32 %s152_s28, 4  ;;  %s587_s29 = int_to_ptr.vmem [resolvable:$true] %s159_s29 }
   0xf   : > { %p589_p8 = pnand %p381_p6, %p85_p4  ;;  %s149_s4 = scalar_lea.sflag [#allocation4], %s148_s22 }
  0x10   : > { %s424_s5 = scalar_lea.hbm %s585_s27, 128  ;;  %s429_s8 = scalar_lea.hbm %s660_s2, 384 }
  0x11   : > { %p425_p11 = scmp.ne.s32.totalorder %s585_s27, %s424_s5  ;;  %p426_p12 = pneg %p589_p8 }
  0x12   : > { %p430_p1 = scmp.lt.s32.totalorder %s585_s27, %s660_s2  ;;  %p431_p2 = scmp.lt.s32.totalorder %s429_s8, %s424_s5 }
  0x13   : > { %p427_p13 = pnand %p426_p12, %p425_p11 }
  0x14   : > { %p432_p3 = por %p431_p2, %p430_p1 }
  0x15   : > { %p428_p0 = pneg %p427_p13 }
  0x17   : > { %p433_p4 = pnand %p432_p3, %p428_p0 }
  0x19   : > { %436 = shalt.err (!%p433_p4)
}
  0x1a   : > { %s437_s11 = scalar_lea.vmem %s587_s29, 128  ;;  %s516_s12 = smov [#allocation3]  }
  0x1b   : > { %p438_p5 = scmp.ne.s32.totalorder %s587_s29, %s437_s11  ;;  %s442_s18 = sshll.u32 %s516_s12, 4  ;;  %s443_s18 = int_to_ptr.vmem [resolvable:$false] %s442_s18 }
  0x1c   : > { %s444_s19 = scalar_lea.vmem %s443_s18, 256  ;;  %p445_p13 = scmp.lt.s32.totalorder %s587_s29, %s443_s18 }
  0x1d   : > { %p440_p6 = pnand %p438_p5, %p426_p12  ;;  %p446_p9 = scmp.lt.s32.totalorder %s444_s19, %s437_s11 }
  0x1f   : > { %p441_p11 = pneg %p440_p6  ;;  %p447_p10 = por %p446_p9, %p445_p13 }
  0x21   : > { %p448_p7 = pnand %p447_p10, %p441_p11 }
  0x23   : > { %451 = shalt.err (!%p448_p7)
}
  0x24   : > { %380 = dma.hbm_to_vmem [thread:$0]  (!%p589_p8), %s585_s27, 128, %s587_s29, %s149_s4  }
  0x25   : > { %p665_p0 = scmp.lt.s32.totalorder %s514_s15, 4  ;;  %p666_p1 = scmp.ge.s32.totalorder %s514_s15, 1 }
  0x27   : > { %p165_p12 = pnand %p666_p1, %p665_p0 }
  0x28   : > { %s170_s22 = sand.u32 (!%p165_p12), 1, %s506_s13   ;;  %p667_p9 = scmp.ne.s32.totalorder (!%p165_p12), %s663_s21, 0 }
  0x29   : > { %168 = sbr.rel (%p165_p12) target bundleno = 734 (0x2de), region = 32  ;;  %s359_s23 = sshll.u32 (!%p165_p12), %s170_s22, 3 }
  0x2a   : > { %s171_s24 = scalar_lea.sflag (!%p165_p12), [#allocation4], %s170_s22  ;;  %s174_s25 = scalar_lea.vmem (!%p165_p12), [#allocation3], %s359_s23 }
  0x2e   : > { %493 = dma.done.wait (%p667_p9), %s171_s24, 128  }
  0x2f   : > { %495 = vsyncadd (%p667_p9), %s171_s24, 4294967168  ;;  %p200_p7 = scmp.lt.s32.totalorder %s559_s16, 2  ;;  %p362_p8 = scmp.ne.s32.totalorder %s559_s16, 0 }
  0x31   : > { %s201_s26 = scalar_select %p200_p7, %s559_s16, 2 }
  0x32   : > { %211 = sbr.rel (%p362_p8) target bundleno = 57 (0x39), region = 40 }
  0x33   : > { %s360_s27 = sshll.u32 %s201_s26, 3 }
  0x34   : > { %s203_s29 = scalar_lea.vmem %s658_s0, %s360_s27  ;;  %s207_s5 = scalar_lea.vmem %s659_s1, %s360_s27 }
  0x37   : > { %vm212_vm0 = vcmask 0   ;;  %v517_v0 = vmov 0.0  }
  0x38   : > { %213 = vst.msk [vmem:[#allocation2] sm:$0x1] %vm212_vm0, %v517_v0 }
  0x39 PF: > { %v216_v1 = vld [vmem:[%s203_s29] sm:$0xff]  ;;  %v518_v2 = vmov 0   ;;  %v217_v5 = vlaneseq  ;;  %s363_s21 = sshll.u32 %s559_s16, 3  ;;  %vm250_vm3 = vcmask 7168   ;;  %vm263_vm4 = vcmask 0   ;;  %p364_p10 = scmp.ne.s32.totalorder %s559_s16, 2 }
  0x3a   : > { %419 = vset.pattern.permute.xlu0 %v518_v2  ;;  %v214_v3 = vld [vmem:[%s207_s5] sm:$0xff]  ;;  %v245_v19 = vstv %s363_s21 }
  0x3b   : > { %220 = vperm.xlu0 %419, %v216_v1   ;;  %v215_v4 = vld [vmem:[%s174_s25] sm:$0xff]  ;;  %v218_v7 = vand.u32 127, %v217_v5  ;;  %v243_v18 = vshrl.u32 %v217_v5, 7 }
  0x3c   : > { %v223_v6 = vsub.f32 %v215_v4, %v214_v3 }
  0x3d   : > { %v246_v22 = vadd.s32 %v245_v19, %v243_v18 }
  0x3e   : > { %v224_v8 = vmul.f32 0.000732796, %v223_v6 }
  0x3f   : > { %vm247_vm2 = vcmp.lt.s32.totalorder %v246_v22, 20  ;;  %v249_v36 = vld [vmem:[#allocation2] sm:$0x1] }
  0xb6   : > { %v221_v9 = vpop.permute.xlu0 %220 }
  0xb7   : > { %vm222_vm1 = vcmp.eq.s32.totalorder %v218_v7, %v221_v9 }
  0xb8   : > { %v225_v10 = vsel %vm222_vm1, %v224_v8, 0.0 }
  0xb9   : > { %v226_v11 = vadd.f32 %v225_v10, %v214_v3 }
  0xbb   : > { %227 = vmax.xlane.f32.xlu0 %v226_v11  ;;  %v237_v16 = vsel %vm222_vm1, %v226_v11, 0.0 }
 0x144   : > { %v228_v12 = vpop.xlane.xlu0 %227 }
 0x145   : > { %v229_v13 = vsub.f32 %v226_v11, %v228_v12 }
 0x147   : > { %v230_v14 = vmul.f32 1.442695, %v229_v13 }
 0x149   : > { %420 = vpow2.f32 %v230_v14 }
 0x156   : > { %v421_v15 = vpop.eup %420 }
 0x157   : > { %232 = vadd.xlane.f32.xlu1 %v421_v15 }
 0x15b   : > { %238 = vadd.xlane.f32.xlu1 %v237_v16 }
 0x1e0   : > { %v233_v17 = vpop.xlane.xlu1 %232 }
 0x1e1   : > { %422 = vlog2.f32 %v233_v17 }
 0x1e4   : > { %v239_v24 = vpop.xlane.xlu1 %238 }
 0x1ee   : > { %v423_v20 = vpop.eup %422 }
 0x1ef   : > { %v235_v21 = vmul.f32 0.6931472, %v423_v20 }
 0x1f1   : > { %v236_v23 = vadd.f32 %v235_v21, %v228_v12 }
 0x1f3   : > { %v240_v25 = vsub.f32 %v239_v24, %v236_v23 }
 0x1f5   : > { %v241_v26 = vsub.f32 0.0, %v240_v25 }
 0x1f7   : > { %v248_v27 = vsel %vm247_vm2, %v241_v26, 0.0 }
 0x1f8   : > { %v251_v28 = vsel %vm250_vm3, %v248_v27, 0.0 }
 0x1f9   : > { %252 = vadd.xlane.f32.xlu1 %v251_v28 }
 0x282   : > { %v253_v29 = vpop.xlane.xlu1 %252 }
 0x283   : > { %v254_v30 = vrot.slane %v253_v29, 4 }
 0x285   : > { %v255_v31 = vadd.f32 %v254_v30, %v253_v29 }
 0x287   : > { %v256_v32 = vrot.slane %v255_v31, 2 }
 0x289   : > { %v257_v33 = vadd.f32 %v256_v32, %v255_v31 }
 0x28b   : > { %v258_v34 = vrot.slane %v257_v33, 1 }
 0x28d   : > { %v259_v35 = vadd.f32 %v258_v34, %v257_v33 }
 0x28f   : > { %369 = vpush %v259_v35 }
 0x2c0   : > { %s370_s6 = spop %369  ;;  %268 = sbr.rel (%p364_p10) target bundleno = 719 (0x2cf), region = 44 }
 0x2c1   : > { %v261_v37 = vstv %s370_s6 }
 0x2c2   : > { %v262_v38 = vadd.f32 %v261_v37, %v249_v36 }
 0x2c4   : > { %264 = vst.msk [vmem:[#allocation2] sm:$0x1] %vm263_vm4, %v262_v38 }
 0x2cb   : > { %v269_v39 = vld [vmem:[#allocation2] sm:$0x1] }
 0x2cc   : > { %v270_v40 = vmul.f32 0.05, %v269_v39 }
 0x2ce   : > { %271 = vst.msk [vmem:[#allocation6] sm:$0x1] %vm263_vm4, %v270_v40 }
 0x2cf PF: > { %p382_p2 = scmp.eq.s32.totalorder %s559_s16, 2  ;;  %s519_s7 = smov [#allocation6]  }
 0x2d0   : > { %s279_s8 = sshll.u32 %s519_s7, 4  ;;  %s280_s8 = int_to_ptr.vmem [resolvable:$true] %s279_s8 }
 0x2d1   : > { %s452_s9 = scalar_lea.vmem %s280_s8, 16  ;;  %s458_s10 = scalar_lea.vmem %s280_s8, 32 }
 0x2d2   : > { %p453_p3 = scmp.ne.s32.totalorder %s280_s8, %s452_s9  ;;  %p459_p6 = scmp.lt.s32.totalorder %s280_s8, %s280_s8 }
 0x2d3   : > { %p460_p11 = scmp.lt.s32.totalorder %s458_s10, %s452_s9 }
 0x2d4   : > { %p454_p4 = pnand %p453_p3, %p382_p2 }
 0x2d5   : > { %p461_p13 = por %p460_p11, %p459_p6 }
 0x2d6   : > { %p455_p5 = pneg %p454_p4 }
 0x2d8   : > { %p462_p0 = pnand %p461_p13, %p455_p5 }
 0x2da   : > { %465 = shalt.err (!%p462_p0)
}
 0x2db   : > { %374 = dma.vmem_to_hbm [thread:$0]  (%p382_p2), %s280_s8, 16, %s661_s3, [#allocation5]  }
 0x2dc   : > { %497 = dma.done.wait (%p382_p2), [#allocation5], 16  }
 0x2dd   : > { %499 = vsyncadd (%p382_p2), [#allocation5], 4294967280 }
 0x2de PF: > { %p14_p1 = scmp.ge.s32.totalorder %s562_s17, 5   ;;  %s668_s12 = smov %s506_s13 }
 0x2df   : > { %s669_s13 = smov %s510_s14  ;;  %s670_s14 = smov %s572_s20 }
 0x2e0   : > { %s671_s15 = smov %s562_s17  ;;  %16 = sbr.rel (!%p14_p1) target bundleno = 4 (0x4), region = 83 }
 0x2e5   :  { %292 = vsyncpa [#allocation4], 1 }
 0x2e6   :  { %294 = vsyncpa [#allocation4 + $0x1], 1 }
 0x2e7   :  { %295 = vsyncpa [#allocation5], 1 }
 0x2e8   :  { %297 = vsyncpa [#allocation5 + $0x1], 1 }

</bundles_post_ra>
